<compile_context>
chip_gen: v7x
topology: tpu7x:2x2x1
jax: 0.10.0
libtpu: 0.0.40
codegen_flags: <defaults>
</compile_context>

<pallas_src>
import functools

import jax
import jax.numpy as jnp
from jax.experimental import pallas as pl
from jax.experimental.pallas import tpu as pltpu

_SQRT_HALF = 0.7071067811865476  # 1/sqrt(2)
_VMEM_LIMIT = 32 * 1024 * 1024   # explicit scoped-VMEM limit (safe on v5e/v6e/v7x)


def _act(x, kind):
    if kind is None:
        return x
    if kind == "gelu":
        # Matches torch.nn.GELU() / F.gelu default (erf-based, not tanh approx).
        return 0.5 * x * (1.0 + jax.lax.erf(x * _SQRT_HALF))
    if kind == "sin":
        return jnp.sin(x)
    raise ValueError(f"unknown activation {kind!r}")


# ----------------------------------------------------------------------------
# In-kernel conv helper: one MXU contraction per conv.
#   x     : (L_in, Cin) f32 value already resident in VMEM/vregs
#   w_big : (Q*stride*Cin, Cout) packed weight (see _pack_weight)
#   b     : (1, Cout)
# Cross-correlation with zero padding, identical to torch.nn.Conv1d semantics.
# ----------------------------------------------------------------------------
def _conv_mxu(x, w_big, b, *, K, stride, pad_left, L_out):
    L_in, Cin = x.shape
    Q = (K - 1) // stride + 1                 # wide rows touched per output position
    L_tot = (L_out + Q - 1) * stride          # padded length (multiple of stride)
    pad_right = L_tot - pad_left - L_in
    if pad_right < 0:                         # trailing rows never read by any output
        x = x[: L_in + pad_right, :]
        pad_right = 0
    parts = []
    if pad_left > 0:
        parts.append(jnp.zeros((pad_left, Cin), x.dtype))
    parts.append(x)
    if pad_right > 0:
        parts.append(jnp.zeros((pad_right, Cin), x.dtype))
    xp = parts[0] if len(parts) == 1 else jnp.concatenate(parts, axis=0)
    if stride > 1:
        # Contiguous reshape: merge `stride` consecutive rows into the lane dim.
        xp = xp.reshape(L_tot // stride, stride * Cin)
    # Build (L_out, Q*stride*Cin) LHS from Q contiguous shifted windows.
    lhs = jnp.concatenate([xp[q:q + L_out, :] for q in range(Q)], axis=-1) \
        if Q > 1 else xp[:L_out, :]
    return jnp.dot(lhs, w_big, preferred_element_type=jnp.float32) + b


def _pack_weight(w_kio, stride):
    """(K, Cin, Cout) conv weight -> (Q*stride*Cin, Cout) matmul weight
    (rows for "taps" k >= K introduced by the stride-merge are zero)."""
    K, Cin, Cout = w_kio.shape
    Q = (K - 1) // stride + 1
    w = w_kio.reshape(K * Cin, Cout)
    extra = (Q * stride - K) * Cin
    if extra > 0:
        w = jnp.concatenate([w, jnp.zeros((extra, Cout), w.dtype)], axis=0)
    return w


# ----------------------------------------------------------------------------
# Kernel A: fused chain of unit-stride convs (+activations), then per-batch
# channel sum / sum-of-squares for the following BatchNorm.  One grid step per
# batch element ("parallel").
# ----------------------------------------------------------------------------
def _convs_stats_kernel(x_ref, *refs, descs):
    # refs = (w_0, b_0, ..., w_{n-1}, b_{n-1}, h_out_ref, stats_out_ref)
    n = len(descs)
    h_ref, st_ref = refs[2 * n], refs[2 * n + 1]
    x = x_ref[0].astype(jnp.float32)
    for i, (K, stride, pad_left, L_out, act) in enumerate(descs):
        w = refs[2 * i][...].astype(jnp.float32)
        b = refs[2 * i + 1][...].astype(jnp.float32)
        x = _act(_conv_mxu(x, w, b, K=K, stride=stride, pad_left=pad_left,
                           L_out=L_out), act)
    h_ref[0] = x.astype(h_ref.dtype)
    s1 = jnp.sum(x, axis=0, keepdims=True)        # (1, C)
    s2 = jnp.sum(x * x, axis=0, keepdims=True)    # (1, C)
    st_ref[0] = jnp.concatenate([s1, s2], axis=0).astype(st_ref.dtype)


def fused_pre_block(x_nlc, convs):
    """convs: list of (w_kio, bias, K, stride(=1), pad, act).  Returns (h, stats)."""
    N, L, Cin = x_nlc.shape
    descs, packed = [], []
    L_cur = L
    for (w, b, K, stride, pad, a) in convs:
        Cout = w.shape[2]
        L_out = (L_cur + 2 * pad - K) // stride + 1
        descs.append((K, stride, pad, L_out, a))
        packed.append(_pack_weight(w, stride))
        packed.append(b.reshape(1, Cout))
        L_cur = L_out
    C_last = convs[-1][0].shape[2]

    in_specs = [pl.BlockSpec((1, L, Cin), lambda n: (n, 0, 0))]
    for arr in packed:
        in_specs.append(pl.BlockSpec(arr.shape, lambda n: (0, 0)))

    kernel = functools.partial(_convs_stats_kernel, descs=tuple(descs))
    h, st = pl.pallas_call(
        kernel,
        grid=(N,),
        in_specs=in_specs,
        out_specs=[pl.BlockSpec((1, L_cur, C_last), lambda n: (n, 0, 0)),
                   pl.BlockSpec((1, 2, C_last), lambda n: (n, 0, 0))],
        out_shape=[jax.ShapeDtypeStruct((N, L_cur, C_last), x_nlc.dtype),
                   jax.ShapeDtypeStruct((N, 2, C_last), jnp.float32)],
        compiler_params=pltpu.CompilerParams(
            dimension_semantics=("parallel",),
            vmem_limit_bytes=_VMEM_LIMIT),
    )(x_nlc, *packed)
    return h, st


# ----------------------------------------------------------------------------
# Kernel B: BatchNorm normalize+affine (from precomputed batch stats) -> conv2
# -> act -> strided downsample conv -> gelu, all fused.  One grid step per
# batch element ("parallel").
# ----------------------------------------------------------------------------
def _bn_convs_kernel(h_ref, st_ref, g_ref, be_ref, w2_ref, b2_ref, wd_ref, bd_ref,
                     o_ref, *, count, eps, K2, pad2, L2, Kd, stride_d, Ld, act):
    h = h_ref[0].astype(jnp.float32)                 # (L, C)
    st = st_ref[...].astype(jnp.float32)             # (N, 2, C)
    s = jnp.sum(st, axis=0)                          # (2, C)
    mean = s[0:1, :] / count
    var = s[1:2, :] / count - mean * mean            # biased var (training-mode BN)
    inv = jax.lax.rsqrt(var + eps)
    gamma = g_ref[...].astype(jnp.float32)
    beta = be_ref[...].astype(jnp.float32)
    hn = (h - mean) * (inv * gamma) + beta

    x = _act(_conv_mxu(hn, w2_ref[...].astype(jnp.float32),
                       b2_ref[...].astype(jnp.float32),
                       K=K2, stride=1, pad_left=pad2, L_out=L2), act)
    y = _act(_conv_mxu(x, wd_ref[...].astype(jnp.float32),
                       bd_ref[...].astype(jnp.float32),
                       K=Kd, stride=stride_d, pad_left=0, L_out=Ld), "gelu")
    o_ref[0] = y.astype(o_ref.dtype)


def fused_bn_convs(h_nlc, stats, gamma, beta, w2, b2, wd, bd, *,
                   K2=5, pad2=2, Kd=5, stride_d=2, act="gelu", eps=1e-5):
    N, L, C = h_nlc.shape
    L2 = L + 2 * pad2 - K2 + 1                             # conv2 preserves length
    pad_needed = max(0, Kd - 2 + (stride_d - 2))           # ConvDownsample right pad
    Ld = (L2 + pad_needed - Kd) // stride_d + 1
    w2p = _pack_weight(w2, 1)
    wdp = _pack_weight(wd, stride_d)

    kernel = functools.partial(
        _bn_convs_kernel, count=float(N * L), eps=eps, K2=K2, pad2=pad2, L2=L2,
        Kd=Kd, stride_d=stride_d, Ld=Ld, act=act)
    return pl.pallas_call(
        kernel,
        grid=(N,),
        in_specs=[
            pl.BlockSpec((1, L, C), lambda n: (n, 0, 0)),
            pl.BlockSpec((N, 2, C), lambda n: (0, 0, 0)),
            pl.BlockSpec((1, C), lambda n: (0, 0)),
            pl.BlockSpec((1, C), lambda n: (0, 0)),
            pl.BlockSpec(w2p.shape, lambda n: (0, 0)),
            pl.BlockSpec((1, C), lambda n: (0, 0)),
            pl.BlockSpec(wdp.shape, lambda n: (0, 0)),
            pl.BlockSpec((1, C), lambda n: (0, 0)),
        ],
        out_specs=pl.BlockSpec((1, Ld, C), lambda n: (n, 0, 0)),
        out_shape=jax.ShapeDtypeStruct((N, Ld, C), h_nlc.dtype),
        compiler_params=pltpu.CompilerParams(
            dimension_semantics=("parallel",),
            vmem_limit_bytes=_VMEM_LIMIT),
    )(h_nlc, stats, gamma.reshape(1, C), beta.reshape(1, C),
      w2p, b2.reshape(1, C), wdp, bd.reshape(1, C))


# ----------------------------------------------------------------------------
# Module-level composition
# ----------------------------------------------------------------------------
def encoder1d_forward(x_ncl, params):
    """x_ncl: (N, C_in, L) as in PyTorch; returns (N, C_last, L_out)."""
    x = jnp.transpose(x_ncl, (0, 2, 1))  # -> (N, L, C)
    levels = params["levels"]
    dims = params["dim_change_list"]

    if not levels:  # degenerate encoder: just the init conv
        h, _ = fused_pre_block(x, [(params["init_w"], params["init_b"], 3, 1, 1, None)])
        return jnp.transpose(h, (0, 2, 1))

    for idx, (level, d) in enumerate(zip(levels, dims)):
        blk = level["block"]
        pre = []
        if idx == 0:
            # Fuse the encoder's init_conv (k=3, pad=1, no act) into level 0's kernel A.
            pre.append((params["init_w"], params["init_b"], 3, 1, 1, None))
        pre.append((blk["w1"], blk["b1"], 5, 1, 2, "gelu"))
        h, st = fused_pre_block(x, pre)
        x = fused_bn_convs(h, st, blk["bn_gamma"], blk["bn_beta"],
                           blk["w2"], blk["b2"],
                           level["down"]["w"], level["down"]["b"],
                           K2=5, pad2=2, Kd=5, stride_d=d, act="gelu")
    return jnp.transpose(x, (0, 2, 1))  # back to (N, C, L_out)


# ----------------------------------------------------------------------------
# Deterministic parameter init (shapes follow Encoder1D.__init__)
# ----------------------------------------------------------------------------
def init_params(key, channel_list, dim_change_list, input_channels=1):
    keys = iter(jax.random.split(key, 8 * (len(dim_change_list) + 1)))

    def conv_init(cin, cout, k):
        kw, kb = jax.random.split(next(keys))
        bound = 1.0 / float(cin * k) ** 0.5  # PyTorch Conv1d default bound
        w = jax.random.uniform(kw, (k, cin, cout), jnp.float32, -bound, bound)
        b = jax.random.uniform(kb, (cout,), jnp.float32, -bound, bound)
        return w, b

    params = {"dim_change_list": tuple(dim_change_list)}
    params["init_w"], params["init_b"] = conv_init(input_channels, channel_list[0], 3)

    levels = []
    for idx, _d in enumerate(dim_change_list):
        cin, cout = channel_list[idx], channel_list[idx + 1]
        w1, b1 = conv_init(cin, cout, 5)
        w2, b2 = conv_init(cout, cout, 5)
        wd, bd = conv_init(cout, cout, 5)
        levels.append({
            "block": {
                "w1": w1, "b1": b1, "w2": w2, "b2": b2,
                "bn_gamma": jnp.ones((cout,), jnp.float32),   # PyTorch BN init
                "bn_beta": jnp.zeros((cout,), jnp.float32),
            },
            "down": {"w": wd, "b": bd},
        })
    params["levels"] = levels
    return params


if __name__ == "__main__":
    key = jax.random.PRNGKey(0)
    kp, kx = jax.random.split(key)

    channel_list = [8, 16, 32]     # len == len(dim_change_list) + 1
    dim_change_list = [2, 2]
    input_channels = 1
    N, L = 2, 32

    params = init_params(kp, channel_list, dim_change_list, input_channels)
    x = jax.random.normal(kx, (N, input_channels, L), jnp.float32)

    y = encoder1d_forward(x, params)
    y = jax.block_until_ready(y)

    # Expected: L -> L/2 -> L/4, channels -> channel_list[-1]
    assert y.shape == (N, channel_list[-1], L // 4), y.shape
    assert bool(jnp.all(jnp.isfinite(y)))
    print("KERNEL_OK")
</pallas_src>

<mosaic_0001>
module attributes {stable_mosaic.version = 11 : i64} {
  func.func @_convs_stats_kernel(%arg0: i32, %arg1: memref<1x32x1xf32, #tpu.memory_space<vmem>>, %arg2: memref<3x8xf32, #tpu.memory_space<vmem>>, %arg3: memref<1x8xf32, #tpu.memory_space<vmem>>, %arg4: memref<40x16xf32, #tpu.memory_space<vmem>>, %arg5: memref<1x16xf32, #tpu.memory_space<vmem>>, %arg6: memref<1x32x16xf32, #tpu.memory_space<vmem>>, %arg7: memref<1x2x16xf32, #tpu.memory_space<vmem>>) attributes {dimension_semantics = [#tpu.dimension_semantics<parallel>], iteration_bounds = array<i64: 2>, scalar_prefetch = 0 : i64, scratch_operands = 0 : i64, tpu.core_type = #tpu.core_type<tc>, window_params = [{transform_indices = @transform_0, window_bounds = array<i64: 1, 32, 1>}, {pipeline_mode = #tpu.pipeline_mode<synchronous>, transform_indices = @transform_1, window_bounds = array<i64: 3, 8>}, {pipeline_mode = #tpu.pipeline_mode<synchronous>, transform_indices = @transform_2, window_bounds = array<i64: 1, 8>}, {pipeline_mode = #tpu.pipeline_mode<synchronous>, transform_indices = @transform_3, window_bounds = array<i64: 40, 16>}, {pipeline_mode = #tpu.pipeline_mode<synchronous>, transform_indices = @transform_4, window_bounds = array<i64: 1, 16>}, {transform_indices = @transform_5, window_bounds = array<i64: 1, 32, 16>}, {transform_indices = @transform_6, window_bounds = array<i64: 1, 2, 16>}]} {
    %c0 = arith.constant 0 : index
    %c0_0 = arith.constant 0 : index
    %c0_1 = arith.constant 0 : index
    %0 = vector.load %arg1[%c0, %c0_0, %c0_1] : memref<1x32x1xf32, #tpu.memory_space<vmem>>, vector<1x32x1xf32>
    %1 = vector.shape_cast %0 : vector<1x32x1xf32> to vector<32x1xf32>
    %c0_2 = arith.constant 0 : index
    %c0_3 = arith.constant 0 : index
    %2 = vector.load %arg2[%c0_2, %c0_3] : memref<3x8xf32, #tpu.memory_space<vmem>>, vector<3x8xf32>
    %c0_4 = arith.constant 0 : index
    %c0_5 = arith.constant 0 : index
    %3 = vector.load %arg3[%c0_4, %c0_5] : memref<1x8xf32, #tpu.memory_space<vmem>>, vector<1x8xf32>
    %cst = arith.constant 0.000000e+00 : f32
    %4 = vector.broadcast %cst : f32 to vector<1x1xf32>
    %cst_6 = arith.constant 0.000000e+00 : f32
    %5 = vector.broadcast %cst_6 : f32 to vector<1x1xf32>
    %6 = tpu.concatenate %4, %1, %5 in 0 : vector<1x1xf32>, vector<32x1xf32>, vector<1x1xf32> -> vector<34x1xf32>
    %7 = vector.extract_strided_slice %6 {offsets = [0, 0], sizes = [32, 1], strides = [1, 1]} : vector<34x1xf32> to vector<32x1xf32>
    %8 = vector.extract_strided_slice %6 {offsets = [1, 0], sizes = [32, 1], strides = [1, 1]} : vector<34x1xf32> to vector<32x1xf32>
    %9 = vector.extract_strided_slice %6 {offsets = [2, 0], sizes = [32, 1], strides = [1, 1]} : vector<34x1xf32> to vector<32x1xf32>
    %10 = tpu.concatenate %7, %8, %9 in 1 : vector<32x1xf32>, vector<32x1xf32>, vector<32x1xf32> -> vector<32x3xf32>
    %cst_7 = arith.constant dense<0.000000e+00> : vector<32x8xf32>
    %11 = tpu.matmul %10, %2, %cst_7 {dimension_numbers = #tpu.dot_dimension_numbers<[1], [0], [0], [1], [0, 0, 1, 1], [], []>} : vector<32x3xf32>, vector<3x8xf32>, vector<32x8xf32> -> vector<32x8xf32>
    %12 = vector.broadcast %3 : vector<1x8xf32> to vector<32x8xf32>
    %13 = arith.addf %11, %12 : vector<32x8xf32>
    %c0_8 = arith.constant 0 : index
    %c0_9 = arith.constant 0 : index
    %14 = vector.load %arg4[%c0_8, %c0_9] : memref<40x16xf32, #tpu.memory_space<vmem>>, vector<40x16xf32>
    %c0_10 = arith.constant 0 : index
    %c0_11 = arith.constant 0 : index
    %15 = vector.load %arg5[%c0_10, %c0_11] : memref<1x16xf32, #tpu.memory_space<vmem>>, vector<1x16xf32>
    %cst_12 = arith.constant 0.000000e+00 : f32
    %16 = vector.broadcast %cst_12 : f32 to vector<2x8xf32>
    %cst_13 = arith.constant 0.000000e+00 : f32
    %17 = vector.broadcast %cst_13 : f32 to vector<2x8xf32>
    %18 = tpu.concatenate %16, %13, %17 in 0 : vector<2x8xf32>, vector<32x8xf32>, vector<2x8xf32> -> vector<36x8xf32>
    %19 = vector.extract_strided_slice %18 {offsets = [0, 0], sizes = [32, 8], strides = [1, 1]} : vector<36x8xf32> to vector<32x8xf32>
    %20 = vector.extract_strided_slice %18 {offsets = [1, 0], sizes = [32, 8], strides = [1, 1]} : vector<36x8xf32> to vector<32x8xf32>
    %21 = vector.extract_strided_slice %18 {offsets = [2, 0], sizes = [32, 8], strides = [1, 1]} : vector<36x8xf32> to vector<32x8xf32>
    %22 = vector.extract_strided_slice %18 {offsets = [3, 0], sizes = [32, 8], strides = [1, 1]} : vector<36x8xf32> to vector<32x8xf32>
    %23 = vector.extract_strided_slice %18 {offsets = [4, 0], sizes = [32, 8], strides = [1, 1]} : vector<36x8xf32> to vector<32x8xf32>
    %24 = tpu.concatenate %19, %20, %21, %22, %23 in 1 : vector<32x8xf32>, vector<32x8xf32>, vector<32x8xf32>, vector<32x8xf32>, vector<32x8xf32> -> vector<32x40xf32>
    %cst_14 = arith.constant dense<0.000000e+00> : vector<32x16xf32>
    %25 = tpu.matmul %24, %14, %cst_14 {dimension_numbers = #tpu.dot_dimension_numbers<[1], [0], [0], [1], [0, 0, 1, 1], [], []>} : vector<32x40xf32>, vector<40x16xf32>, vector<32x16xf32> -> vector<32x16xf32>
    %26 = vector.broadcast %15 : vector<1x16xf32> to vector<32x16xf32>
    %27 = arith.addf %25, %26 : vector<32x16xf32>
    %cst_15 = arith.constant 5.000000e-01 : f32
    %28 = vector.broadcast %cst_15 : f32 to vector<32x16xf32>
    %29 = arith.mulf %28, %27 : vector<32x16xf32>
    %cst_16 = arith.constant 0.707106769 : f32
    %30 = vector.broadcast %cst_16 : f32 to vector<32x16xf32>
    %31 = arith.mulf %27, %30 : vector<32x16xf32>
    %32 = math.erf %31 : vector<32x16xf32>
    %cst_17 = arith.constant 1.000000e+00 : f32
    %33 = vector.broadcast %cst_17 : f32 to vector<32x16xf32>
    %34 = arith.addf %33, %32 : vector<32x16xf32>
    %35 = arith.mulf %29, %34 : vector<32x16xf32>
    %c0_18 = arith.constant 0 : index
    %c0_19 = arith.constant 0 : index
    %c0_20 = arith.constant 0 : index
    %36 = vector.load %arg6[%c0_18, %c0_19, %c0_20] : memref<1x32x16xf32, #tpu.memory_space<vmem>>, vector<1x32x16xf32>
    %37 = vector.shape_cast %36 : vector<1x32x16xf32> to vector<32x16xf32>
    %38 = vector.shape_cast %35 : vector<32x16xf32> to vector<1x32x16xf32>
    tpu.vector_store %arg6[%c0_18, %c0_19, %c0_20], %38 {strides = array<i32>} : memref<1x32x16xf32, #tpu.memory_space<vmem>>, vector<1x32x16xf32>,
    %cst_21 = arith.constant dense<0.000000e+00> : vector<16xf32>
    %39 = vector.multi_reduction <add>, %35, %cst_21 [0] : vector<32x16xf32> to vector<16xf32>
    %40 = vector.shape_cast %39 : vector<16xf32> to vector<1x16xf32>
    %41 = arith.mulf %35, %35 : vector<32x16xf32>
    %cst_22 = arith.constant dense<0.000000e+00> : vector<16xf32>
    %42 = vector.multi_reduction <add>, %41, %cst_22 [0] : vector<32x16xf32> to vector<16xf32>
    %43 = vector.shape_cast %42 : vector<16xf32> to vector<1x16xf32>
    %44 = tpu.concatenate %40, %43 in 0 : vector<1x16xf32>, vector<1x16xf32> -> vector<2x16xf32>
    %c0_23 = arith.constant 0 : index
    %c0_24 = arith.constant 0 : index
    %c0_25 = arith.constant 0 : index
    %45 = vector.load %arg7[%c0_23, %c0_24, %c0_25] : memref<1x2x16xf32, #tpu.memory_space<vmem>>, vector<1x2x16xf32>
    %46 = vector.shape_cast %45 : vector<1x2x16xf32> to vector<2x16xf32>
    %47 = vector.shape_cast %44 : vector<2x16xf32> to vector<1x2x16xf32>
    tpu.vector_store %arg7[%c0_23, %c0_24, %c0_25], %47 {strides = array<i32>} : memref<1x2x16xf32, #tpu.memory_space<vmem>>, vector<1x2x16xf32>,
    return
  }
  func.func @transform_0(%arg0: i32) -> (i32, i32, i32) {
    %c0_i32 = arith.constant 0 : i32
    %c0_i32_0 = arith.constant 0 : i32
    %c0_i32_1 = arith.constant 0 : i32
    return %arg0, %c0_i32, %c0_i32_0 : i32, i32, i32
  }
  func.func @transform_1(%arg0: i32) -> (i32, i32) {
    %c0_i32 = arith.constant 0 : i32
    %c0_i32_0 = arith.constant 0 : i32
    %c0_i32_1 = arith.constant 0 : i32
    return %c0_i32, %c0_i32_0 : i32, i32
  }
  func.func @transform_2(%arg0: i32) -> (i32, i32) {
    %c0_i32 = arith.constant 0 : i32
    %c0_i32_0 = arith.constant 0 : i32
    %c0_i32_1 = arith.constant 0 : i32
    return %c0_i32, %c0_i32_0 : i32, i32
  }
  func.func @transform_3(%arg0: i32) -> (i32, i32) {
    %c0_i32 = arith.constant 0 : i32
    %c0_i32_0 = arith.constant 0 : i32
    %c0_i32_1 = arith.constant 0 : i32
    return %c0_i32, %c0_i32_0 : i32, i32
  }
  func.func @transform_4(%arg0: i32) -> (i32, i32) {
    %c0_i32 = arith.constant 0 : i32
    %c0_i32_0 = arith.constant 0 : i32
    %c0_i32_1 = arith.constant 0 : i32
    return %c0_i32, %c0_i32_0 : i32, i32
  }
  func.func @transform_5(%arg0: i32) -> (i32, i32, i32) {
    %c0_i32 = arith.constant 0 : i32
    %c0_i32_0 = arith.constant 0 : i32
    %c0_i32_1 = arith.constant 0 : i32
    return %arg0, %c0_i32, %c0_i32_0 : i32, i32, i32
  }
  func.func @transform_6(%arg0: i32) -> (i32, i32, i32) {
    %c0_i32 = arith.constant 0 : i32
    %c0_i32_0 = arith.constant 0 : i32
    %c0_i32_1 = arith.constant 0 : i32
    return %arg0, %c0_i32, %c0_i32_0 : i32, i32, i32
  }
}

</mosaic_0001>

<bundles_post_ra>
// kernel: tpu_custom_call.1
= control target key start
LH: loop header
LB: loop body
LE: loop exit
PB: predicated region body
PF: predicated region fallthrough
CT: control target
= control target key end

     0   :  { %12 = vsyncpa [#allocation3], 0  ;;  %s1350_s0 = inlined_call_operand.vmem [shape: f32[2,32,1], index: 0, kind: input, shape index: {}]   ;;  %s1351_s1 = inlined_call_operand.vmem [shape: f32[3,8], index: 1, kind: input, shape index: {}]   ;;  %s1352_s2 = inlined_call_operand.vmem [shape: f32[1,8], index: 2, kind: input, shape index: {}]   ;;  %s1353_s3 = inlined_call_operand.vmem [shape: f32[40,16], index: 3, kind: input, shape index: {}]   ;;  %s1354_s4 = inlined_call_operand.vmem [shape: f32[1,16], index: 4, kind: input, shape index: {}]   ;;  %s1355_s5 = inlined_call_operand.vmem [shape: f32[2,32,16], index: 5, kind: output, shape index: {0}]   ;;  %s1356_s6 = inlined_call_operand.hbm [shape: f32[2,2,16], index: 6, kind: output, shape index: {1}]  }
   0x1   :  { %14 = vsyncpa [#allocation3 + $0x1], 0  ;;  %s1089_s21 = smov 0   ;;  %s1091_s22 = smov 0  }
   0x2   :  { %s1093_s23 = smov 0   ;;  %s1095_s24 = smov 0  }
   0x3 LB: > { %s1110_s25 = sadd.s32 4294967295, %s1045_s24   ;;  %s852_s26 = sadd.s32 4294967294, %s1045_s24   ;;  %s1045_s24 = sphi %s1095_s24, %s1362_s24   ;;  %s1041_s23 = sphi %s1093_s23, %s1361_s23   ;;  %s1037_s22 = sphi %s1091_s22, %s1360_s22   ;;  %s1033_s21 = sphi %s1089_s21, %s1359_s21  }
   0x4   : > { %s1114_s27 = sadd.s32 1, %s1045_s24   ;;  %s163_s28 = sadd.s32 1, %s1041_s23 }
   0x5   : > { %s160_s29 = ssub.s32 %s1045_s24, %s1114_s27  ;;  %p173_p0 = scmp.ne.s32.totalorder %s1041_s23, %s1037_s22 }
   0x6   : > { %p161_p1 = scmp.eq.s32.totalorder %s160_s29, 0  ;;  %p174_p2 = scmp.eq.s32.totalorder %s1110_s25, 1 }
   0x7   : > { %p179_p3 = scmp.ne.s32.totalorder %s1037_s22, %s1033_s21  ;;  %p180_p4 = scmp.eq.s32.totalorder %s852_s26, 1 }
   0x8   : > { %s1125_s30 = scalar_select %p161_p1, %s1041_s23, %s163_s28  }
   0x9   : > { %p1127_p5 = por %p174_p2, %p173_p0  ;;  %p1131_p6 = por %p180_p4, %p179_p3 }
   0xa   : > { %p855_p7 = scmp.ge.s32.totalorder %s1045_s24, 1  ;;  %p218_p8 = scmp.lt.s32.totalorder %s1045_s24, 3 }
   0xc   : > { %p219_p9 = pnand %p855_p7, %p218_p8 }
   0xd   : > { %p253_p10 = scmp.lt.s32.totalorder (!%p219_p9), %s1110_s25, 1  ;;  %v267_v0 = vld [vmem:[%s1351_s1] sm:$0x7] (!%p219_p9)  ;;  %vm363_vm0 = vcmask (!%p219_p9), 1042432   ;;  %vm273_vm1 = vcmask (!%p219_p9), 1040384   ;;  %vm312_vm2 = vcmask (!%p219_p9), 1045504  }
   0xe   : > { %222 = sbr.rel (%p219_p9) target bundleno = 785 (0x311), region = 40  ;;  %892 = vmatprep.subr.msk.mxu0 (!%p219_p9), %vm363_vm0, %v267_v0  ;;  %vm290_vm3 = vcmask (!%p219_p9), 1046528   ;;  %s1047_s16 = smov (!%p219_p9), 2   ;;  %vm334_vm4 = vcmask (!%p219_p9), 7168   ;;  %vm339_vm5 = vcmask (!%p219_p9), 15360   ;;  %vm350_vm6 = vcmask (!%p219_p9), 23552  }
   0xf   : > { %893 = vmatpush3.msk.msra.mxu0 (!%p219_p9), %vm363_vm0, %v267_v0  ;;  %s1048_s17 = smov (!%p219_p9), 1   ;;  %v861_v48 = vld [vmem:[%s1352_s2] ss:$0 sm:$0xff] (!%p219_p9)  ;;  %vm462_vm7 = vcmask (!%p219_p9), 1041408   ;;  %vm521_vm8 = vcmask (!%p219_p9), 1044480   ;;  %s1049_s10 = smov (!%p219_p9), 24  }
  0x10   : > { %s1050_s11 = smov (!%p219_p9), 8   ;;  %vm543_vm9 = vcmask (!%p219_p9), 1043456   ;;  %s1051_s13 = smov (!%p219_p9), 32   ;;  %vm565_vm10 = vcmask (!%p219_p9), 64512   ;;  %vm570_vm11 = vcmask (!%p219_p9), 130048   ;;  %vm575_vm12 = vcmask (!%p219_p9), 195584  }
  0x11   : > { %s1052_s14 = smov (!%p219_p9), 16   ;;  %vm580_vm13 = vcmask (!%p219_p9), 261120   ;;  %vm591_vm14 = vcmask (!%p219_p9), 326656   ;;  %vm744_vm15 = vcmask (!%p219_p9), 123904   ;;  %s1053_s20 = smov (!%p219_p9), [#allocation2]  }
  0x12   : > { %s987_s26 = sshll.u32 (!%p219_p9), %s1053_s20, 4  ;;  %s988_s26 = int_to_ptr.vmem [resolvable:$false] %s987_s26 }
  0x13   : > { %s989_s28 = scalar_lea.vmem (!%p219_p9), %s988_s26, 64 }
  0x15   : > { %s1139_s9 = scalar_select %p253_p10, %s1110_s25, 1 }
  0x17   : > { %s876_s12 = sshll.u32 %s1139_s9, 5  ;;  %s250_s9 = sand.u32 1, %s1037_s22  }
  0x18   : > { %s257_s15 = scalar_lea.vmem %s1350_s0, %s876_s12  ;;  %s752_s19 = scalar_lea.sflag [#allocation3], %s250_s9 }
  0x19   : > { %v263_v1 = vld [vmem:[%s257_s15] sm:$0xff]  ;;  %v264_v2 = vld [vmem:[%s257_s15 + $0x8] sm:$0xff]  ;;  %v265_v3 = vld [vmem:[%s257_s15 + $0x10] sm:$0xff] }
  0x1a   : > { %v274_v4 = vrot.slane %v263_v1, 7  ;;  %v275_v5 = vrot.slane %v264_v2, 7  ;;  %v277_v6 = vrot.slane %v265_v3, 7  ;;  %v266_v7 = vld [vmem:[%s257_s15 + $0x18] sm:$0xff] }
  0x1b   : > { %v279_v8 = vrot.slane %v266_v7, 7  ;;  %v453_v7 = vld [vmem:[%s1353_s3 + $0x8] sm:$0xff] }
  0x1c   : > { %v276_v9 = vsel %vm273_vm1, %v274_v4, %v275_v5  ;;  %v286_v10 = vsel %vm273_vm1, 0.0, %v274_v4  ;;  %v278_v11 = vsel %vm273_vm1, %v275_v5, %v277_v6 }
  0x1d   : > { %v313_v12 = vrot.slane %v286_v10, 2  ;;  %v314_v13 = vrot.slane %v276_v9, 2  ;;  %v291_v14 = vrot.slane %v286_v10, 1  ;;  %v292_v15 = vrot.slane %v276_v9, 1 }
  0x1e   : > { %v316_v16 = vrot.slane %v278_v11, 2  ;;  %v294_v17 = vrot.slane %v278_v11, 1  ;;  %v280_v18 = vsel %vm273_vm1, %v277_v6, %v279_v8  ;;  %v287_v19 = vsel %vm273_vm1, %v279_v8, 0.0  ;;  %v452_v6 = vld [vmem:[%s1353_s3] sm:$0xff] }
  0x1f   : > { %v315_v20 = vsel %vm312_vm2, %v313_v12, %v314_v13  ;;  %v293_v21 = vsel %vm290_vm3, %v291_v14, %v292_v15  ;;  %v296_v24 = vrot.slane %v280_v18, 1  ;;  %v298_v25 = vrot.slane %v287_v19, 1 }
  0x20   : > { %322 = vrot.lane.b32.xlu1 %v315_v20, %s1047_s16  ;;  %300 = vrot.lane.b32.xlu0 %v293_v21, %s1048_s17  ;;  %v317_v22 = vsel %vm312_vm2, %v314_v13, %v316_v16  ;;  %v295_v23 = vsel %vm290_vm3, %v292_v15, %v294_v17  ;;  %v318_v28 = vrot.slane %v280_v18, 2  ;;  %v320_v29 = vrot.slane %v287_v19, 2 }
  0x21   : > { %v299_v26 = vsel %vm290_vm3, %v296_v24, %v298_v25  ;;  %v297_v27 = vsel %vm290_vm3, %v294_v17, %v296_v24  ;;  %v455_v24 = vld [vmem:[%s1353_s3 + $0x18] sm:$0xff] }
  0x22   : > { %v321_v30 = vsel %vm312_vm2, %v318_v28, %v320_v29  ;;  %v319_v31 = vsel %vm312_vm2, %v316_v16, %v318_v28 }
  0x24   : > { %324 = vrot.lane.b32.xlu1 %v317_v22, %s1047_s16  ;;  %302 = vrot.lane.b32.xlu0 %v295_v23, %s1048_s17  ;;  %v454_v23 = vld [vmem:[%s1353_s3 + $0x10] sm:$0xff] }
  0x25   : > { %v920_v25 = vpack.c.bf16 %v455_v24, %v454_v23 }
  0x28   : > { %306 = vrot.lane.b32.xlu1 %v299_v26, %s1048_s17  ;;  %304 = vrot.lane.b32.xlu0 %v297_v27, %s1048_s17 }
  0x2c   : > { %328 = vrot.lane.b32.xlu1 %v321_v30, %s1047_s16  ;;  %326 = vrot.lane.b32.xlu0 %v319_v31, %s1047_s16  ;;  %v456_v30 = vld [vmem:[%s1353_s3 + $0x20] sm:$0xff] }
  0x92   : > { %v323_v32 = vpop.permute.xlu1 %322  ;;  %v301_v33 = vpop.permute.xlu0 %300 }
  0x93   : > { %v335_v34 = vsel %vm334_vm4, %v286_v10, %v301_v33  ;;  %v916_v10 = vpack.c.bf16 %v453_v7, %v452_v6 }
  0x94   : > { %v340_v35 = vsel %vm339_vm5, %v335_v34, %v323_v32 }
  0x95   : > { %894 = vmatprep.mubr.msk.f32.mxu0 %vm350_vm6, %v340_v35  ;;  %917 = vmatprep.subr.bf16.mxu0 %v916_v10 }
  0x96   : > { %v325_v36 = vpop.permute.xlu1 %324  ;;  %v303_v37 = vpop.permute.xlu0 %302  ;;  %924 = vmatprep.subr.bf16.mxu1 %v916_v10 }
  0x97   : > { %v336_v38 = vsel %vm334_vm4, %v276_v9, %v303_v37  ;;  %927 = vmatpush3.bf16.msra.mxu1 %v916_v10 }
  0x98   : > { %v341_v39 = vsel %vm339_vm5, %v336_v38, %v325_v36  ;;  %925 = vmatprep.subr.bf16.mxu1 %v920_v25 }
  0x99   : > { %895 = vmatmul.mubr.msk.f32.vlgmr.msra.gmra.mrb[0].mxu0 %vm350_vm6, %v341_v39 }
  0x9a   : > { %v307_v40 = vpop.permute.xlu1 %306  ;;  %v305_v41 = vpop.permute.xlu0 %304  ;;  %919 = vmatpush3.bf16.msra.mxu0 %v916_v10 }
  0x9b   : > { %v338_v42 = vsel %vm334_vm4, %v280_v18, %v307_v40  ;;  %v337_v43 = vsel %vm334_vm4, %v278_v11, %v305_v41  ;;  %921 = vmatprep.subr.bf16.mxu0 %v920_v25  ;;  %928 = vmatpush3.bf16.msra.mxu1 %v920_v25 }
  0x9c   : > { %926 = vmatprep.subr.mxu1 %v456_v30 }
  0x9e   : > { %v329_v44 = vpop.permute.xlu1 %328  ;;  %v327_v45 = vpop.permute.xlu0 %326  ;;  %923 = vmatpush3.bf16.msra.mxu0 %v920_v25 }
  0x9f   : > { %v343_v46 = vsel %vm339_vm5, %v338_v42, %v329_v44  ;;  %v342_v47 = vsel %vm339_vm5, %v337_v43, %v327_v45  ;;  %908 = vmatprep.subr.mxu0 %v456_v30  ;;  %929 = vmatpush3.msra.mxu1 %v456_v30 }
  0xa0   : > { %897 = vmatprep.mubr.msk.f32.mxu0 %vm350_vm6, %v342_v47 }
  0xa1   : > { %898 = vmatmul.mubr.msk.f32.gmra.mrb[2].mxu0 %vm350_vm6, %v343_v46 }
  0xa2   : > { %909 = vmatpush3.msra.mxu0 %v456_v30 }
 0x16c   : > { %v896_v49 = vpop.f32.mrb[0].mxu0 }
 0x16d   : > { %v439_v50 = vadd.f32 %v896_v49, %v861_v48  ;;  %v433_v51 = vpop.f32.mrb[1].mxu0 }
 0x16e   : > { %v434_v52 = vadd.f32 %v861_v48, %v433_v51 }
 0x16f   : > { %v464_v53 = vrot.slane %v439_v50, 6 }
 0x170   : > { %v463_v54 = vrot.slane %v434_v52, 6 }
 0x172   : > { %v1179_v55 = vsel %vm462_vm7, %v463_v54, %v464_v53  ;;  %v1182_v56 = vsel %vm462_vm7, 0.0, %v463_v54 }
 0x173   : > { %v522_v57 = vrot.slane %v1182_v56, 3  ;;  %v523_v58 = vrot.slane %v1179_v55, 3  ;;  %v479_v59 = vrot.slane %v1182_v56, 1  ;;  %v480_v60 = vrot.slane %v1179_v55, 1 }
 0x174   : > { %v899_v61 = vpop.f32.mrb[2].mxu0  ;;  %v544_v62 = vrot.slane %v1182_v56, 4  ;;  %v545_v63 = vrot.slane %v1179_v55, 4  ;;  %v500_v0 = vrot.slane %v1182_v56, 2  ;;  %v501_v5 = vrot.slane %v1179_v55, 2 }
 0x175   : > { %v449_v1 = vadd.f32 %v899_v61, %v861_v48  ;;  %v443_v2 = vpop.f32.mrb[3].mxu0  ;;  %v524_v3 = vsel %vm521_vm8, %v522_v57, %v523_v58  ;;  %v481_v4 = vsel %vm290_vm3, %v479_v59, %v480_v60 }
 0x176   : > { %v444_v8 = vadd.f32 %v861_v48, %v443_v2  ;;  %531 = vrot.lane.b32.xlu1 %v524_v3, %s1049_s10  ;;  %488 = vrot.lane.b32.xlu0 %v481_v4, %s1050_s11  ;;  %v546_v12 = vsel %vm543_vm9, %v544_v62, %v545_v63  ;;  %v502_v13 = vsel %vm312_vm2, %v500_v0, %v501_v5 }
 0x177   : > { %v468_v9 = vrot.slane %v449_v1, 6 }
 0x178   : > { %v466_v11 = vrot.slane %v444_v8, 6 }
 0x179   : > { %v476_v14 = vsel %vm462_vm7, %v468_v9, 0.0 }
 0x17a   : > { %v1208_v15 = vsel %vm462_vm7, %v464_v53, %v466_v11  ;;  %v1211_v16 = vsel %vm462_vm7, %v466_v11, %v468_v9  ;;  %553 = vrot.lane.b32.xlu1 %v546_v12, %s1051_s13  ;;  %509 = vrot.lane.b32.xlu0 %v502_v13, %s1052_s14  ;;  %v486_v22 = vrot.slane %v476_v14, 1  ;;  %v507_v33 = vrot.slane %v476_v14, 2  ;;  %v867_v13 = vld [vmem:[%s1354_s4] ss:$0 sm:$0xff] }
 0x17b   : > { %v503_v17 = vrot.slane %v1208_v15, 2  ;;  %v482_v18 = vrot.slane %v1208_v15, 1  ;;  %v484_v21 = vrot.slane %v1211_v16, 1  ;;  %v525_v28 = vrot.slane %v1208_v15, 3 }
 0x17c   : > { %v505_v29 = vrot.slane %v1211_v16, 2  ;;  %v527_v34 = vrot.slane %v1211_v16, 3  ;;  %v547_v37 = vrot.slane %v1208_v15, 4  ;;  %v529_v38 = vrot.slane %v476_v14, 3 }
 0x17d   : > { %v504_v19 = vsel %vm312_vm2, %v501_v5, %v503_v17  ;;  %v483_v20 = vsel %vm290_vm3, %v480_v60, %v482_v18  ;;  %v487_v26 = vsel %vm290_vm3, %v484_v21, %v486_v22  ;;  %v485_v27 = vsel %vm290_vm3, %v482_v18, %v484_v21 }
 0x17e   : > { %511 = vrot.lane.b32.xlu0 %v504_v19, %s1052_s14  ;;  %490 = vrot.lane.b32.xlu1 %v483_v20, %s1050_s11  ;;  %v526_v31 = vsel %vm521_vm8, %v523_v58, %v525_v28  ;;  %v506_v32 = vsel %vm312_vm2, %v503_v17, %v505_v29  ;;  %v508_v35 = vsel %vm312_vm2, %v505_v29, %v507_v33  ;;  %v549_v41 = vrot.slane %v1211_v16, 4 }
 0x17f   : > { %v528_v36 = vsel %vm521_vm8, %v525_v28, %v527_v34  ;;  %v548_v39 = vsel %vm543_vm9, %v545_v63, %v547_v37  ;;  %v530_v40 = vsel %vm521_vm8, %v527_v34, %v529_v38  ;;  %v551_v42 = vrot.slane %v476_v14, 4 }
 0x180   : > { %v550_v43 = vsel %vm543_vm9, %v547_v37, %v549_v41 }
 0x181   : > { %v552_v44 = vsel %vm543_vm9, %v549_v41, %v551_v42 }
 0x182   : > { %494 = vrot.lane.b32.xlu0 %v487_v26, %s1050_s11  ;;  %492 = vrot.lane.b32.xlu1 %v485_v27, %s1050_s11  ;;  %s262_s11 = scalar_lea.vmem %s1355_s5, %s876_s12  ;;  %s856_s12 = sshll.u32 %s250_s9, 1 }
 0x186   : > { %533 = vrot.lane.b32.xlu0 %v526_v31, %s1049_s10  ;;  %513 = vrot.lane.b32.xlu1 %v506_v32, %s1052_s14 }
 0x18a   : > { %515 = vrot.lane.b32.xlu0 %v508_v35, %s1052_s14  ;;  %535 = vrot.lane.b32.xlu1 %v528_v36, %s1049_s10  ;;  %s252_s14 = scalar_lea.vmem [#allocation2], %s856_s12 }
 0x18b   : > { %s768_s15 = sshll.u32 %s252_s14, 4  ;;  %s1309_s15 = int_to_ptr.vmem [resolvable:$true] %s768_s15 }
 0x18c   : > { %p990_p0 = scmp.lt.s32.totalorder %s1309_s15, %s988_s26 }
 0x18e   : > { %555 = vrot.lane.b32.xlu0 %v548_v39, %s1051_s13  ;;  %537 = vrot.lane.b32.xlu1 %v530_v40, %s1049_s10 }
 0x192   : > { %557 = vrot.lane.b32.xlu0 %v550_v43, %s1051_s13  ;;  %559 = vrot.lane.b32.xlu1 %v552_v44, %s1051_s13  ;;  %s873_s13 = sshll.u32 %s1110_s25, 5  ;;  %s983_s25 = scalar_lea.vmem %s1309_s15, 32 }
 0x193   : > { %s1307_s18 = scalar_lea.hbm %s1356_s6, %s873_s13  ;;  %p984_p11 = scmp.ne.s32.totalorder %s1309_s15, %s983_s25 }
 0x194   : > { %p991_p1 = scmp.lt.s32.totalorder %s989_s28, %s983_s25 }
 0x195   : > { %p985_p12 = pnand %p984_p11, %p1127_p5 }
 0x196   : > { %p992_p2 = por %p991_p1, %p990_p0 }
 0x197   : > { %p986_p13 = pneg %p985_p12 }
 0x199   : > { %p993_p3 = pnand %p992_p2, %p986_p13 }
 0x1e8   : > { %v532_v45 = vpop.permute.xlu1 %531  ;;  %v489_v46 = vpop.permute.xlu0 %488 }
 0x1e9   : > { %v566_v47 = vsel %vm565_vm10, %v1182_v56, %v489_v46 }
 0x1ec   : > { %v554_v48 = vpop.permute.xlu1 %553  ;;  %v510_v49 = vpop.permute.xlu0 %509 }
 0x1ed   : > { %v571_v50 = vsel %vm570_vm11, %v566_v47, %v510_v49 }
 0x1ee   : > { %v576_v51 = vsel %vm575_vm12, %v571_v50, %v532_v45 }
 0x1ef   : > { %v581_v52 = vsel %vm580_vm13, %v576_v51, %v554_v48 }
 0x1f0   : > { %v491_v53 = vpop.permute.xlu1 %490  ;;  %910 = vmatprep.mubr.msk.f32.mxu0 %vm591_vm14, %v581_v52  ;;  %v512_v54 = vpop.permute.xlu0 %511 }
 0x1f1   : > { %v567_v56 = vsel %vm565_vm10, %v1179_v55, %v491_v53 }
 0x1f2   : > { %v572_v63 = vsel %vm570_vm11, %v567_v56, %v512_v54 }
 0x1f4   : > { %v493_v57 = vpop.permute.xlu1 %492  ;;  %v495_v58 = vpop.permute.xlu0 %494 }
 0x1f5   : > { %v568_v4 = vsel %vm565_vm10, %v1208_v15, %v493_v57  ;;  %v569_v5 = vsel %vm565_vm10, %v1211_v16, %v495_v58 }
 0x1f8   : > { %v514_v59 = vpop.permute.xlu1 %513  ;;  %v534_v60 = vpop.permute.xlu0 %533 }
 0x1f9   : > { %v577_v0 = vsel %vm575_vm12, %v572_v63, %v534_v60  ;;  %v573_v55 = vsel %vm570_vm11, %v568_v4, %v514_v59 }
 0x1fc   : > { %v536_v61 = vpop.permute.xlu1 %535  ;;  %v516_v62 = vpop.permute.xlu0 %515 }
 0x1fd   : > { %v574_v6 = vsel %vm570_vm11, %v569_v5, %v516_v62  ;;  %v578_v7 = vsel %vm575_vm12, %v573_v55, %v536_v61 }
 0x200   : > { %v538_v1 = vpop.permute.xlu1 %537  ;;  %v556_v2 = vpop.permute.xlu0 %555 }
 0x201   : > { %v582_v3 = vsel %vm580_vm13, %v577_v0, %v556_v2  ;;  %v579_v8 = vsel %vm575_vm12, %v574_v6, %v538_v1 }
 0x202   : > { %911 = vmatmul.mubr.msk.f32.vlgmr.msra.gmra.mrb[4].mxu0 %vm591_vm14, %v582_v3 }
 0x204   : > { %v560_v9 = vpop.permute.xlu1 %559  ;;  %v558_v10 = vpop.permute.xlu0 %557 }
 0x205   : > { %v584_v11 = vsel %vm580_vm13, %v579_v8, %v560_v9  ;;  %v583_v12 = vsel %vm580_vm13, %v578_v7, %v558_v10 }
 0x206   : > { %913 = vmatprep.mubr.msk.f32.mxu1 %vm591_vm14, %v583_v12 }
 0x207   : > { %914 = vmatmul.mubr.msk.f32.vlgmr.msra.gmra.mrb[0].mxu1 %vm591_vm14, %v584_v11 }
 0x2d5   : > { %v912_v14 = vpop.f32.mrb[4].mxu0 }
 0x2d6   : > { %v676_v15 = vadd.f32 %v912_v14, %v867_v13  ;;  %v670_v16 = vpop.f32.mrb[5].mxu0 }
 0x2d7   : > { %v671_v17 = vadd.f32 %v867_v13, %v670_v16 }
 0x2d8   : > { %v694_v18 = vmul.f32 0.70710677, %v676_v15  ;;  %v690_v28 = vmul.f32 0.5, %v676_v15 }
 0x2d9   : > { %v693_v19 = vmul.f32 0.70710677, %v671_v17  ;;  %v689_v30 = vmul.f32 0.5, %v671_v17 }
 0x2da   : > { %975 = verf.f32 %v694_v18  ;;  %v915_v20 = vpop.f32.mrb[0].mxu1 }
 0x2db   : > { %977 = verf.f32 %v693_v19  ;;  %v686_v21 = vadd.f32 %v915_v20, %v867_v13  ;;  %v680_v22 = vpop.f32.mrb[1].mxu1 }
 0x2dc   : > { %v681_v23 = vadd.f32 %v867_v13, %v680_v22 }
 0x2dd   : > { %v696_v24 = vmul.f32 0.70710677, %v686_v21  ;;  %v692_v40 = vmul.f32 0.5, %v686_v21 }
 0x2de   : > { %v695_v25 = vmul.f32 0.70710677, %v681_v23  ;;  %v691_v44 = vmul.f32 0.5, %v681_v23 }
 0x2df   : > { %979 = verf.f32 %v696_v24 }
 0x2e0   : > { %981 = verf.f32 %v695_v25 }
 0x2e4   : > { %v976_v26 = vpop.eup %975 }
 0x2e5   : > { %v978_v27 = vpop.eup %977  ;;  %v702_v29 = vadd.f32 1.0, %v976_v26 }
 0x2e6   : > { %v701_v31 = vadd.f32 1.0, %v978_v27 }
 0x2e7   : > { %v706_v32 = vmul.f32 %v702_v29, %v690_v28 }
 0x2e8   : > { %v705_v33 = vmul.f32 %v701_v31, %v689_v30 }
 0x2e9   : > { %v980_v34 = vpop.eup %979  ;;  %710 = vst.msk [vmem:[%s262_s11 + $0x8] sm:$0xff] %vm570_vm11, %v706_v32  ;;  %v714_v35 = vsel %vm570_vm11, %v706_v32, 0.0  ;;  %v727_v36 = vmul.f32 %v706_v32, %v706_v32 }
 0x2ea   : > { %v982_v37 = vpop.eup %981  ;;  %709 = vst.msk [vmem:[%s262_s11] sm:$0xff] %vm570_vm11, %v705_v33  ;;  %v713_v38 = vsel %vm570_vm11, %v705_v33, 0.0  ;;  %v726_v39 = vmul.f32 %v705_v33, %v705_v33  ;;  %v704_v41 = vadd.f32 1.0, %v980_v34 }
 0x2eb   : > { %v731_v42 = vsel %vm570_vm11, %v727_v36, 0.0  ;;  %v715_v43 = vadd.f32 %v714_v35, %v713_v38  ;;  %v703_v45 = vadd.f32 1.0, %v982_v37 }
 0x2ec   : > { %v730_v46 = vsel %vm570_vm11, %v726_v39, 0.0  ;;  %v708_v47 = vmul.f32 %v704_v41, %v692_v40 }
 0x2ed   : > { %v732_v48 = vadd.f32 %v731_v42, %v730_v46  ;;  %v707_v49 = vmul.f32 %v703_v45, %v691_v44 }
 0x2ee   : > { %712 = vst.msk [vmem:[%s262_s11 + $0x18] sm:$0xff] %vm570_vm11, %v708_v47  ;;  %v729_v50 = vmul.f32 %v708_v47, %v708_v47  ;;  %v718_v54 = vsel %vm570_vm11, %v708_v47, 0.0 }
 0x2ef   : > { %711 = vst.msk [vmem:[%s262_s11 + $0x10] sm:$0xff] %vm570_vm11, %v707_v49  ;;  %v716_v51 = vsel %vm570_vm11, %v707_v49, 0.0  ;;  %v728_v52 = vmul.f32 %v707_v49, %v707_v49 }
 0x2f0   : > { %v717_v53 = vadd.f32 %v716_v51, %v715_v43  ;;  %v735_v60 = vsel %vm570_vm11, %v729_v50, 0.0 }
 0x2f1   : > { %v733_v57 = vsel %vm570_vm11, %v728_v52, 0.0 }
 0x2f2   : > { %v719_v58 = vadd.f32 %v718_v54, %v717_v53  ;;  %v734_v59 = vadd.f32 %v733_v57, %v732_v48 }
 0x2f4   : > { %v720_v56 = vrot.slane %v719_v58, 4  ;;  %v736_v61 = vadd.f32 %v735_v60, %v734_v59 }
 0x2f6   : > { %v721_v62 = vadd.f32 %v720_v56, %v719_v58  ;;  %v737_v63 = vrot.slane %v736_v61, 4 }
 0x2f8   : > { %v722_v0 = vrot.slane %v721_v62, 2  ;;  %v738_v1 = vadd.f32 %v737_v63, %v736_v61 }
 0x2fa   : > { %v723_v2 = vadd.f32 %v722_v0, %v721_v62  ;;  %v739_v3 = vrot.slane %v738_v1, 2 }
 0x2fc   : > { %v724_v4 = vrot.slane %v723_v2, 1  ;;  %v740_v5 = vadd.f32 %v739_v3, %v738_v1 }
 0x2fe   : > { %v741_v55 = vrot.slane %v740_v5, 1  ;;  %v725_v6 = vadd.f32 %v724_v4, %v723_v2 }
 0x300   : > { %v742_v7 = vadd.f32 %v741_v55, %v740_v5 }
 0x302   : > { %v743_v8 = vsel %vm273_vm1, %v725_v6, %v742_v7 }
 0x303   : > { %745 = vst.msk [vmem:[%s252_s14] sm:$0x3] %vm744_vm15, %v743_v8 }
 0x304   : > { %996 = shalt.err (!%p993_p3)
}
 0x305   : > { %s997_s29 = scalar_lea.hbm %s1307_s18, 32  ;;  %s1001_s9 = scalar_lea.hbm %s1356_s6, 64 }
 0x306   : > { %p998_p4 = scmp.ne.s32.totalorder %s1307_s18, %s997_s29  ;;  %p1002_p9 = scmp.lt.u32.totalorder %s1307_s18, %s1356_s6 }
 0x307   : > { %p1003_p10 = scmp.lt.u32.totalorder %s1001_s9, %s997_s29  ;;  %p1005_p12 = scmp.lt.u32.totalorder %s997_s29, %s1307_s18 }
 0x308   : > { %p999_p7 = pnand %p998_p4, %p1127_p5 }
 0x309   : > { %p1004_p11 = por %p1003_p10, %p1002_p9 }
 0x30a   : > { %p1000_p8 = pneg %p999_p7 }
 0x30b   : > { %p1006_p13 = por %p1005_p12, %p1004_p11 }
 0x30d   : > { %p1007_p0 = pnand %p1006_p13, %p1000_p8 }
 0x30f   : > { %1010 = shalt.err (!%p1007_p0)
}
 0x310   : > { %930 = dma.vmem_to_hbm [thread:$0]  (%p1127_p5), %s1309_s15, 32, %s1307_s18, %s752_s19  }
 0x311 PF: > { %p936_p1 = scmp.ge.s32.totalorder %s1045_s24, 2  ;;  %s788_s14 = sand.u32 1, %s1033_s21  }
 0x312   : > { %s789_s16 = scalar_lea.sflag [#allocation3], %s788_s14 }
 0x313   : > { %p933_p2 = pnand %p936_p1, %p1131_p6 }
 0x315   : > { %1028 = dma.done.wait (!%p933_p2), %s789_s16, 32  }
 0x316   : > { %1030 = vsyncadd (!%p933_p2), %s789_s16, 4294967264  ;;  %p17_p3 = scmp.ge.s32.totalorder %s1114_s27, 4   ;;  %s1359_s21 = smov %s1037_s22 }
 0x317   : > { %s1360_s22 = smov %s1041_s23  ;;  %s1361_s23 = smov %s1125_s30 }
 0x318   : > { %s1362_s24 = smov %s1114_s27  ;;  %19 = sbr.rel (!%p17_p3) target bundleno = 3 (0x3), region = 87 }
 0x31f   :  { %794 = vsyncpa [#allocation3], 1 }
 0x320   :  { %796 = vsyncpa [#allocation3 + $0x1], 1 }

</bundles_post_ra>
